<compile_context>
chip_gen: v7x
topology: tpu7x:2x2x1
jax: 0.10.0
libtpu: 0.0.40
codegen_flags: <defaults>
</compile_context>

<pallas_src>
import functools
import math

import jax
import jax.numpy as jnp
from jax import lax
from jax.experimental import pallas as pl
from jax.experimental.pallas import tpu as pltpu


def _round_up(n, k):
    return (n + k - 1) // k * k


def _vmem_budget():
    """(tile budget, scoped VMEM limit) derived from the chip's physical VMEM."""
    try:
        cap = int(pltpu.get_tpu_info().vmem_capacity_bytes)
    except Exception:
        cap = 64 * 1024 * 1024  # conservative (v7x per-TC VMEM)
    budget = max(int(cap * 0.60), 32 * 1024 * 1024)
    limit = min(int(cap * 0.75), cap - 8 * 1024 * 1024)
    return budget, limit


def _choose_tiles(B, C, D, x_itemsize, w_itemsize, out_itemsize, budget):
    """Pick (TB, TC, Bp, Cp) so double-buffered tiles fit the VMEM budget."""
    b8 = _round_up(max(B, 1), 8)
    # Prefer keeping the whole batch resident: weight then streams exactly once.
    if 2 * b8 * D * x_itemsize <= budget // 3:
        TB = b8
    else:
        TB = 256
    Bp = _round_up(B, TB)

    # Remaining budget after the (double-buffered) x tile + label/inv_x tiles.
    avail = budget - 2 * TB * D * x_itemsize - 4 * TB * 8
    per_col = 2 * D * w_itemsize + 2 * TB * out_itemsize  # weight col + out col (dbl-buf)
    tc = avail // max(per_col, 1)
    TC = max(128, min(8192, (tc // 128) * 128))
    TC = min(TC, _round_up(C, 128))
    Cp = _round_up(C, TC)
    return TB, TC, Bp, Cp


def add_margin_kernel(label_ref, inv_xs_ref, x_ref, wt_ref, out_ref, *, s_m, tc):
    # label_ref: (TB,1) i32 | inv_xs_ref: (TB,1) f32 (= s / ||x||)
    # x_ref: (TB,D)          | wt_ref: (D,TC) column-normalized | out_ref: (TB,TC)
    dot = jnp.dot(x_ref[...], wt_ref[...], preferred_element_type=jnp.float32)
    scaled = dot * inv_xs_ref[...]                       # s * cosine
    col0 = pl.program_id(0) * tc                         # grid axis 0 = C-tiles
    col_ids = col0 + lax.broadcasted_iota(jnp.int32, scaled.shape, 1)
    out_ref[...] = jnp.where(col_ids == label_ref[...], scaled - s_m, scaled).astype(
        out_ref.dtype
    )


def add_margin_product(x, weight, label, s=30.0, m=0.4,
                       mxu_dtype=jnp.bfloat16, out_dtype=jnp.float32):
    """x: (B, D) float, weight: (C, D) float (nn.Linear layout), label: (B,) int."""
    B, D = x.shape
    C, D2 = weight.shape
    assert D == D2

    x_f32 = x.astype(jnp.float32)
    w_f32 = weight.astype(jnp.float32)

    # Exact f32 norms (eps matches F.normalize(eps=1e-12)); s folded into inv_x.
    inv_xs = (s / jnp.maximum(jnp.linalg.norm(x_f32, axis=1, keepdims=True), 1e-12)
              ).astype(jnp.float32)                                       # (B,1)
    w_norm = w_f32 / jnp.maximum(
        jnp.linalg.norm(w_f32, axis=1, keepdims=True), 1e-12)             # (C,D)
    w_t = jnp.transpose(w_norm)                                           # (D,C)

    x_mxu = x_f32.astype(mxu_dtype)
    w_t = w_t.astype(mxu_dtype)

    budget, vmem_limit = _vmem_budget()
    x_item = jnp.dtype(mxu_dtype).itemsize
    out_item = jnp.dtype(out_dtype).itemsize
    TB, TC, Bp, Cp = _choose_tiles(B, C, D, x_item, x_item, out_item, budget)

    # Zero-pad to tile multiples; pad labels with -1 so no pad column ever
    # receives the margin.  Pad rows/cols produce zeros and are sliced off.
    if Bp != B:
        x_mxu = jnp.pad(x_mxu, ((0, Bp - B), (0, 0)))
        inv_xs = jnp.pad(inv_xs, ((0, Bp - B), (0, 0)))
    if Cp != C:
        w_t = jnp.pad(w_t, ((0, 0), (0, Cp - C)))
    label2d = jnp.pad(label.astype(jnp.int32).reshape(B, 1),
                      ((0, Bp - B), (0, 0)), constant_values=-1)

    grid = (Cp // TC, Bp // TB)  # C-tiles leading (megacore split), B innermost
    kernel = functools.partial(add_margin_kernel, s_m=float(s) * float(m), tc=TC)

    out = pl.pallas_call(
        kernel,
        out_shape=jax.ShapeDtypeStruct((Bp, Cp), out_dtype),
        grid_spec=pltpu.PrefetchScalarGridSpec(
            num_scalar_prefetch=0,
            grid=grid,
            in_specs=[
                pl.BlockSpec((TB, 1), lambda j, i: (i, 0)),   # label
                pl.BlockSpec((TB, 1), lambda j, i: (i, 0)),   # s / ||x||
                pl.BlockSpec((TB, D), lambda j, i: (i, 0)),   # x tile (D whole)
                pl.BlockSpec((D, TC), lambda j, i: (0, j)),   # normalized W.T tile
            ],
            out_specs=pl.BlockSpec((TB, TC), lambda j, i: (i, j)),
        ),
        compiler_params=pltpu.CompilerParams(
            dimension_semantics=("parallel", "parallel"),
            vmem_limit_bytes=vmem_limit,
        ),
    )(label2d, inv_xs, x_mxu, w_t)

    return out[:B, :C]


def xavier_uniform(key, out_features, in_features):
    # torch.nn.init.xavier_uniform_: U(-a, a), a = sqrt(6 / (fan_in + fan_out))
    a = math.sqrt(6.0 / (in_features + out_features))
    return jax.random.uniform(
        key, (out_features, in_features), minval=-a, maxval=a, dtype=jnp.float32
    )


def _reference(x, weight, label, s, m):
    xn = x / jnp.maximum(jnp.linalg.norm(x, axis=1, keepdims=True), 1e-12)
    wn = weight / jnp.maximum(jnp.linalg.norm(weight, axis=1, keepdims=True), 1e-12)
    cosine = xn @ wn.T
    one_hot = jax.nn.one_hot(label, weight.shape[0], dtype=jnp.float32)
    return s * (one_hot * (cosine - m) + (1.0 - one_hot) * cosine)


if __name__ == "__main__":
    key = jax.random.PRNGKey(0)
    k_x, k_w, k_l, k_x2, k_w2, k_l2 = jax.random.split(key, 6)

    s, m = 30.0, 0.4

    # Case 1: aligned shapes, bf16 MXU streaming (default) + f32 exact path.
    B, in_features, out_features = 8, 32, 128
    x = jax.random.normal(k_x, (B, in_features), dtype=jnp.float32)
    weight = xavier_uniform(k_w, out_features, in_features)
    label = jax.random.randint(k_l, (B,), 0, out_features, dtype=jnp.int32)
    ref = _reference(x, weight, label, s, m)

    out_bf16 = jax.block_until_ready(add_margin_product(x, weight, label, s=s, m=m))
    assert jnp.allclose(out_bf16, ref, atol=0.25), float(jnp.max(jnp.abs(out_bf16 - ref)))

    out_f32 = jax.block_until_ready(
        add_margin_product(x, weight, label, s=s, m=m, mxu_dtype=jnp.float32))
    assert jnp.allclose(out_f32, ref, atol=1e-4, rtol=1e-4), \
        float(jnp.max(jnp.abs(out_f32 - ref)))

    # Case 2: non-divisible B / C (exercises the padding path), f32 MXU.
    B2, D2, C2 = 5, 20, 100
    x2 = jax.random.normal(k_x2, (B2, D2), dtype=jnp.float32)
    w2 = xavier_uniform(k_w2, C2, D2)
    l2 = jax.random.randint(k_l2, (B2,), 0, C2, dtype=jnp.int32)
    ref2 = _reference(x2, w2, l2, s, m)
    out2 = jax.block_until_ready(
        add_margin_product(x2, w2, l2, s=s, m=m, mxu_dtype=jnp.float32))
    assert out2.shape == (B2, C2)
    assert jnp.allclose(out2, ref2, atol=1e-4, rtol=1e-4), \
        float(jnp.max(jnp.abs(out2 - ref2)))

    print("KERNEL_OK")
</pallas_src>

<mosaic_0001>
module attributes {stable_mosaic.version = 11 : i64} {
  func.func @add_margin_kernel(%arg0: i32, %arg1: i32, %arg2: memref<8x1xi32, #tpu.memory_space<vmem>>, %arg3: memref<8x1xf32, #tpu.memory_space<vmem>>, %arg4: memref<8x32xbf16, #tpu.memory_space<vmem>>, %arg5: memref<32x128xbf16, #tpu.memory_space<vmem>>, %arg6: memref<8x128xf32, #tpu.memory_space<vmem>>) attributes {dimension_semantics = [#tpu.dimension_semantics<parallel>, #tpu.dimension_semantics<parallel>], iteration_bounds = array<i64: 1, 1>, scalar_prefetch = 0 : i64, scratch_operands = 0 : i64, tpu.core_type = #tpu.core_type<tc>, window_params = [{transform_indices = @transform_0, window_bounds = array<i64: 8, 1>}, {transform_indices = @transform_1, window_bounds = array<i64: 8, 1>}, {transform_indices = @transform_2, window_bounds = array<i64: 8, 32>}, {transform_indices = @transform_3, window_bounds = array<i64: 32, 128>}, {transform_indices = @transform_4, window_bounds = array<i64: 8, 128>}]} {
    %c0 = arith.constant 0 : index
    %c0_0 = arith.constant 0 : index
    %0 = vector.load %arg4[%c0, %c0_0] : memref<8x32xbf16, #tpu.memory_space<vmem>>, vector<8x32xbf16>
    %c0_1 = arith.constant 0 : index
    %c0_2 = arith.constant 0 : index
    %1 = vector.load %arg5[%c0_1, %c0_2] : memref<32x128xbf16, #tpu.memory_space<vmem>>, vector<32x128xbf16>
    %cst = arith.constant dense<0.000000e+00> : vector<8x128xf32>
    %2 = tpu.matmul %0, %1, %cst {dimension_numbers = #tpu.dot_dimension_numbers<[1], [0], [0], [1], [0, 0, 1, 1], [], []>} : vector<8x32xbf16>, vector<32x128xbf16>, vector<8x128xf32> -> vector<8x128xf32>
    %c0_3 = arith.constant 0 : index
    %c0_4 = arith.constant 0 : index
    %3 = vector.load %arg3[%c0_3, %c0_4] : memref<8x1xf32, #tpu.memory_space<vmem>>, vector<8x1xf32>
    %4 = vector.broadcast %3 : vector<8x1xf32> to vector<8x128xf32>
    %5 = arith.mulf %2, %4 : vector<8x128xf32>
    %c128_i32 = arith.constant 128 : i32
    %6 = arith.muli %arg0, %c128_i32 : i32
    %7 = tpu.iota {dimensions = array<i32: 1>} : vector<8x128xi32>
    %8 = vector.broadcast %6 : i32 to vector<8x128xi32>
    %9 = arith.addi %8, %7 : vector<8x128xi32>
    %c0_5 = arith.constant 0 : index
    %c0_6 = arith.constant 0 : index
    %10 = vector.load %arg2[%c0_5, %c0_6] : memref<8x1xi32, #tpu.memory_space<vmem>>, vector<8x1xi32>
    %11 = vector.broadcast %10 : vector<8x1xi32> to vector<8x128xi32>
    %12 = arith.cmpi eq, %9, %11 : vector<8x128xi32>
    %cst_7 = arith.constant 1.200000e+01 : f32
    %13 = vector.broadcast %cst_7 : f32 to vector<8x128xf32>
    %14 = arith.subf %5, %13 : vector<8x128xf32>
    %15 = arith.select %12, %14, %5 : vector<8x128xi1>, vector<8x128xf32>
    %c0_8 = arith.constant 0 : index
    %c0_9 = arith.constant 0 : index
    %16 = vector.load %arg6[%c0_8, %c0_9] : memref<8x128xf32, #tpu.memory_space<vmem>>, vector<8x128xf32>
    tpu.vector_store %arg6[%c0_8, %c0_9], %15 {strides = array<i32>} : memref<8x128xf32, #tpu.memory_space<vmem>>, vector<8x128xf32>,
    return
  }
  func.func @transform_0(%arg0: i32, %arg1: i32) -> (i32, i32) {
    %c0_i32 = arith.constant 0 : i32
    %c0_i32_0 = arith.constant 0 : i32
    return %arg1, %c0_i32 : i32, i32
  }
  func.func @transform_1(%arg0: i32, %arg1: i32) -> (i32, i32) {
    %c0_i32 = arith.constant 0 : i32
    %c0_i32_0 = arith.constant 0 : i32
    return %arg1, %c0_i32 : i32, i32
  }
  func.func @transform_2(%arg0: i32, %arg1: i32) -> (i32, i32) {
    %c0_i32 = arith.constant 0 : i32
    %c0_i32_0 = arith.constant 0 : i32
    return %arg1, %c0_i32 : i32, i32
  }
  func.func @transform_3(%arg0: i32, %arg1: i32) -> (i32, i32) {
    %c0_i32 = arith.constant 0 : i32
    %c0_i32_0 = arith.constant 0 : i32
    return %c0_i32, %arg0 : i32, i32
  }
  func.func @transform_4(%arg0: i32, %arg1: i32) -> (i32, i32) {
    %c0_i32 = arith.constant 0 : i32
    return %arg1, %arg0 : i32, i32
  }
}

</mosaic_0001>

<bundles_post_ra>
// kernel: tpu_custom_call.1
= control target key start
LH: loop header
LB: loop body
LE: loop exit
PB: predicated region body
PF: predicated region fallthrough
CT: control target
= control target key end

     0   :  { %v160_v1 = vmov 0.0   ;;  %vm161_vm0 = vmmov 0   ;;  %v162_v4 = vmov 0   ;;  %s216_s0 = inlined_call_operand.vmem [shape: s32[8,1], index: 0, kind: input, shape index: {}]   ;;  %s217_s1 = inlined_call_operand.vmem [shape: f32[8,1], index: 1, kind: input, shape index: {}]   ;;  %s218_s2 = inlined_call_operand.vmem [shape: bf16[8,32], index: 2, kind: input, shape index: {}]   ;;  %s219_s3 = inlined_call_operand.vmem [shape: bf16[32,128], index: 3, kind: input, shape index: {}]   ;;  %s220_s4 = inlined_call_operand.hbm [shape: f32[8,128], index: 4, kind: output, shape index: {}]  }
   0x1   :  { %v134_v0 = vld [vmem:[%s219_s3] sm:$0xff]   ;;  %121 = vmatprep.subr.bf16.mxu0 %v160_v1  ;;  %v135_v2 = vld [vmem:[%s219_s3 + $0x8] sm:$0xff]   ;;  %125 = vmatprep.mubr.msk.bf16.mxu0 %vm161_vm0, %v160_v1 }
   0x2   :  { %122 = vmatpush3.bf16.msra.mxu0 %v134_v0  ;;  %v80_v3 = vld [vmem:[%s217_s1] sm:$0xff]  ;;  %133 = vset.pattern.permute.xlu0 %v162_v4 }
   0x3   :  { %123 = vmatprep.subr.bf16.mxu0 %v160_v1 }
   0x4   :  { %9 = vsyncpa [#allocation3], 0  ;;  %83 = vperm.xlu0 %133, %v80_v3   ;;  %v92_v5 = vld [vmem:[%s216_s0] sm:$0xff]  ;;  %vm36_vm1 = vcmask 261120   ;;  %v88_v8 = vlaneseq  ;;  %s163_s1 = smov [#allocation2]  }
   0x5   :  { %v19_v6 = vld [vmem:[%s218_s2] sm:$0xf]  ;;  %s106_s3 = sshll.u32 %s163_s1, 4  ;;  %s107_s3 = int_to_ptr.vmem [resolvable:$true] %s106_s3 }
   0x6   :  { %124 = vmatpush3.bf16.msra.mxu0 %v135_v2  ;;  %v89_v9 = vand.u32 127, %v88_v8  ;;  %s136_s0 = scalar_lea.vmem %s107_s3, 128  ;;  %p141_p1 = scmp.lt.s32.totalorder %s107_s3, %s107_s3 }
   0x7   :  { %p137_p0 = scmp.ne.s32.totalorder %s107_s3, %s136_s0  ;;  %p142_p2 = scmp.lt.s32.totalorder %s136_s0, %s136_s0 }
   0x8   :  { %94 = vperm.xlu0 %133, %v92_v5  }
   0x9   :  { %126 = vmatmul.mubr.msk.bf16.vlgmr.msra.gmra.mrb[0].mxu0 %vm36_vm1, %v19_v6  ;;  %p143_p3 = por %p142_p2, %p141_p1 }
   0xb   :  { %p144_p4 = pnand %p143_p3, %p137_p0 }
  0x83   :  { %v84_v7 = vpop.permute.xlu0 %83 }
  0x87   :  { %v95_v11 = vpop.permute.xlu0 %94 }
  0x88   :  { %vm96_vm2 = vcmp.eq.s32.totalorder %v89_v9, %v95_v11 }
  0xdc   :  { %v74_v10 = vpop.f32.mrb[0].mxu0 }
  0xdd   :  { %v86_v12 = vmul.f32 %v84_v7, %v74_v10  ;;  %v127_v13 = vpop.f32.mrb[1].mxu0 }
  0xde   :  { %v77_v14 = vpop.f32.mrb[2].mxu0 }
  0xdf   :  { %v117_v15 = vadd.f32 -12.0, %v86_v12  ;;  %v128_v16 = vpop.f32.mrb[3].mxu0 }
  0xe1   :  { %v98_v17 = vsel %vm96_vm2, %v117_v15, %v86_v12 }
  0xe2   :  { %99 = vst [vmem:[#allocation2] sm:$0xff] %v98_v17 }
  0xe3   :  { %147 = shalt.err (!%p144_p4)
}
  0xe4   :  { %s148_s26 = scalar_lea.hbm %s220_s4, 128 }
  0xe5   :  { %p149_p5 = scmp.ne.s32.totalorder %s220_s4, %s148_s26  ;;  %p152_p6 = scmp.lt.u32.totalorder %s148_s26, %s220_s4 }
  0xe7   :  { %p154_p7 = pnand %p152_p6, %p149_p5 }
  0xe9   :  { %157 = shalt.err (!%p154_p7)
}
  0xea   :  { %109 = dma.vmem_to_hbm [thread:$0]  %s107_s3, 128, %s220_s4, [#allocation3]  }
  0xeb   :  { %158 = dma.done.wait [#allocation3], 128  }
  0xec   :  { %159 = vsyncadd [#allocation3], 4294967168 }
  0xed   :  { %113 = vsyncpa [#allocation3], 1 }

</bundles_post_ra>
